<compile_context>
chip_gen: v5e
topology: v5e:2x2
jax: 0.10.0
libtpu: 0.0.40
codegen_flags: <defaults>
</compile_context>

<pallas_src>
import functools
import math

import jax
import jax.numpy as jnp
from jax import lax
from jax.experimental import pallas as pl
from jax.experimental.pallas import tpu as pltpu


def _attn_pool_single_kernel(x_ref, w_ref, o_ref):
    """Fast path: whole sequence resident in one tile — plain softmax + weighted sum."""
    xf = x_ref[...].astype(jnp.float32)                              # (TB, L, D)
    w = w_ref[...].astype(jnp.float32)                               # (1, D)

    # Scores live on the sublane axis (keepdims lane-reduce): (TB, L, 1).
    scores = jnp.sum(xf * w[None, :, :], axis=-1, keepdims=True)
    m = jnp.max(scores, axis=1)                                      # (TB, 1)
    p = jnp.exp(scores - m[:, None, :])                              # (TB, L, 1)
    denom = jnp.sum(p, axis=1)                                       # (TB, 1)
    num = jnp.sum(xf * p, axis=1)                                    # (TB, D)
    o_ref[...] = (num * pl.reciprocal(denom, approx=False)).astype(o_ref.dtype)


def _attn_pool_online_kernel(x_ref, w_ref, o_ref, m_sc, l_sc, acc_sc, *, seq_len, tl):
    """Online softmax over the L grid axis (axis 1, 'arbitrary', last)."""
    li = pl.program_id(1)

    @pl.when(li == 0)
    def _():
        m_sc[...] = jnp.full_like(m_sc, -jnp.inf)
        l_sc[...] = jnp.zeros_like(l_sc)
        acc_sc[...] = jnp.zeros_like(acc_sc)

    tb = x_ref.shape[0]
    xf = x_ref[...].astype(jnp.float32)                              # (TB, TL, D)
    w = w_ref[...].astype(jnp.float32)                               # (1, D)

    # Ragged L tail handled in-kernel (no wrapper pad): zero overhang rows so garbage cannot
    # reach the weighted sum, and push their scores to -inf so they get zero softmax weight.
    pos = li * tl + lax.broadcasted_iota(jnp.int32, (tb, tl, 1), 1)
    valid = pos < seq_len                                            # (TB, TL, 1)
    xf = jnp.where(valid, xf, 0.0)

    scores = jnp.sum(xf * w[None, :, :], axis=-1, keepdims=True)     # (TB, TL, 1)
    scores = jnp.where(valid, scores, -jnp.inf)

    m_prev = m_sc[...]                                               # (TB, 1)
    m_new = jnp.maximum(m_prev, jnp.max(scores, axis=1))             # (TB, 1)
    alpha = jnp.exp(m_prev - m_new)                                  # (TB, 1)
    p = jnp.exp(scores - m_new[:, None, :])                          # (TB, TL, 1)

    l_sc[...] = alpha * l_sc[...] + jnp.sum(p, axis=1)               # (TB, 1)
    acc_sc[...] = alpha * acc_sc[...] + jnp.sum(xf * p, axis=1)      # (TB, D)
    m_sc[...] = m_new

    @pl.when(li == pl.num_programs(1) - 1)
    def _():
        o_ref[...] = (acc_sc[...] *
                      pl.reciprocal(l_sc[...], approx=False)).astype(o_ref.dtype)


def attention_pool(x, weight, bias=None, *, tb=None, tl=None, interpret=False):
    """AttentionPool forward.

    x:      [B, L, D]
    weight: nn.Linear(D, 1) weight; accepts shape (1, D), (D, 1) or (D,)
    bias:   ignored — softmax over the sequence axis is shift-invariant, so the per-batch
            constant `+ b` cancels exactly (same output as the PyTorch module).
    Returns [B, D].
    """
    B, L, D = x.shape
    del bias  # mathematically a no-op under softmax(dim=1)
    # Keep the scoring weight in f32 (only D floats; the kernel computes in f32 anyway).
    w_row = jnp.asarray(weight).reshape(1, D).astype(jnp.float32)

    itemsize = x.dtype.itemsize
    # Sublane packing multiple for the x tile / output block (f32: 8, bf16: 16, int8/fp8: 32).
    sub = {4: 8, 2: 16, 1: 32}.get(itemsize, 8)

    # ---- generation-aware VMEM budget ----
    vmem_cap = 64 << 20                       # conservative default (v7x per-TC VMEM)
    try:
        vmem_cap = int(getattr(pltpu.get_tpu_info(), "vmem_capacity_bytes", vmem_cap))
    except Exception:
        pass
    # Double-buffered x-tile budget: ~72 MiB on 128 MiB parts (v5e/v6e), ~24 MiB on v7x.
    x_budget = (72 << 20) if vmem_cap >= (96 << 20) else (24 << 20)

    # ---- batch tile: big enough for efficient DMAs; >=2 (prefer 4) parallel steps (megacore) ----
    if tb is None:
        if B <= sub:
            tb = B            # block == full batch dim (see TODO: single parallel step)
        else:
            tb = min((min(B, 64) // sub) * sub, B)
            target_steps = 4 if B >= 4 * sub else 2
            while tb > sub and pl.cdiv(B, tb) < target_steps:
                tb -= sub
    else:
        tb = max(1, min(int(tb), B))
        if tb != B and tb % sub != 0:         # out block must be sublane-aligned or full-dim
            tb = B if B <= sub else max(sub, (tb // sub) * sub)

    # ---- sequence tile: whole L resident if it fits the (double-buffered, dtype-aware) budget ----
    if tl is None:
        if 2 * tb * L * D * itemsize <= x_budget:
            tl = L
        else:
            tl = max(sub, ((x_budget // (2 * tb * D * itemsize)) // sub) * sub)
    tl = max(1, min(int(tl), L))
    if tl != L:
        tl = max(sub, (tl // sub) * sub)
        if tl >= L:
            tl = L

    b_steps = pl.cdiv(B, tb)
    l_steps = pl.cdiv(L, tl)

    # Explicit VMEM limit: actual double-buffered tile footprint + scratch + fixed headroom.
    need = (2 * tb * tl * D * itemsize        # x tile (double-buffered)
            + 2 * D * 4                       # w (f32, double-buffered)
            + 2 * tb * D * itemsize           # output tile (double-buffered)
            + (2 * tb + tb * D) * 4)          # m/l/acc scratch (f32)
    vmem_limit = int(max(16 << 20, min(need + (8 << 20), vmem_cap - (8 << 20))))

    out_shape = jax.ShapeDtypeStruct((B, D), x.dtype)

    if l_steps == 1:
        # Fast path: single L step, no online-softmax bookkeeping / scratch.
        return pl.pallas_call(
            _attn_pool_single_kernel,
            out_shape=out_shape,
            grid_spec=pltpu.PrefetchScalarGridSpec(
                num_scalar_prefetch=0,
                grid=(b_steps,),
                in_specs=[
                    pl.BlockSpec((tb, L, D), lambda bi: (bi, 0, 0)),
                    pl.BlockSpec((1, D), lambda bi: (0, 0)),
                ],
                out_specs=pl.BlockSpec((tb, D), lambda bi: (bi, 0)),
            ),
            compiler_params=pltpu.CompilerParams(
                dimension_semantics=("parallel",),
                vmem_limit_bytes=vmem_limit,
            ),
            interpret=interpret,
        )(x, w_row)

    kernel = functools.partial(_attn_pool_online_kernel, seq_len=L, tl=tl)
    return pl.pallas_call(
        kernel,
        out_shape=out_shape,
        grid_spec=pltpu.PrefetchScalarGridSpec(
            num_scalar_prefetch=0,
            grid=(b_steps, l_steps),          # batch parallel (megacore), L arbitrary (last)
            in_specs=[
                pl.BlockSpec((tb, tl, D), lambda bi, li: (bi, li, 0)),
                pl.BlockSpec((1, D), lambda bi, li: (0, 0)),
            ],
            out_specs=pl.BlockSpec((tb, D), lambda bi, li: (bi, 0)),
            scratch_shapes=[
                pltpu.VMEM((tb, 1), jnp.float32),   # running max m
                pltpu.VMEM((tb, 1), jnp.float32),   # running denom l
                pltpu.VMEM((tb, D), jnp.float32),   # running weighted-sum acc
            ],
        ),
        compiler_params=pltpu.CompilerParams(
            dimension_semantics=("parallel", "arbitrary"),
            vmem_limit_bytes=vmem_limit,
        ),
        interpret=interpret,
    )(x, w_row)


def reference_attention_pool(x, weight, bias):
    """Pure-JAX reference matching the PyTorch AttentionPool (with the bias included)."""
    w_row = jnp.asarray(weight).reshape(1, -1)
    scores = jnp.einsum("bld,od->blo", x, w_row) + bias              # (B, L, 1)
    weights = jax.nn.softmax(scores, axis=1)
    return jnp.sum(x * weights, axis=1)                              # (B, D)


if __name__ == "__main__":
    key = jax.random.PRNGKey(0)

    # 1) Small shapes consistent with the module heads (encoder_output is [B, N, D*M]):
    #    single-L-step fast path, no padding anywhere.
    B, L, D = 2, 8, 32
    kx, kw, kb = jax.random.split(key, 3)
    x = jax.random.normal(kx, (B, L, D), dtype=jnp.float32)
    bound = 1.0 / math.sqrt(D)  # nn.Linear(D, 1) default init range
    w = jax.random.uniform(kw, (1, D), dtype=jnp.float32, minval=-bound, maxval=bound)
    b = jax.random.uniform(kb, (), dtype=jnp.float32, minval=-bound, maxval=bound)

    out = jax.block_until_ready(attention_pool(x, w, b))
    ref = reference_attention_pool(x, w, b)
    assert out.shape == (B, D)
    assert jnp.allclose(out, ref, atol=1e-5, rtol=1e-5), "mismatch (single-step path)"

    # 2) Online-softmax path with ragged L AND ragged B handled purely in-kernel (no jnp.pad).
    B2, L2, D2 = 10, 37, 128
    kx2, kw2, kb2 = jax.random.split(jax.random.PRNGKey(1), 3)
    x2 = jax.random.normal(kx2, (B2, L2, D2), dtype=jnp.float32)
    w2 = jax.random.uniform(kw2, (1, D2), dtype=jnp.float32, minval=-0.1, maxval=0.1)
    b2 = jnp.float32(0.03)
    out2 = jax.block_until_ready(attention_pool(x2, w2, b2, tb=8, tl=16))
    ref2 = reference_attention_pool(x2, w2, b2)
    assert out2.shape == (B2, D2)
    assert jnp.allclose(out2, ref2, atol=1e-5, rtol=1e-5), "mismatch (online/ragged path)"

    # 3) bf16 input: exercises dtype-aware tile sizing and the ragged-tail mask in bf16.
    B3, L3, D3 = 4, 50, 256
    kx3, kw3 = jax.random.split(jax.random.PRNGKey(2), 2)
    x3 = jax.random.normal(kx3, (B3, L3, D3), dtype=jnp.float32).astype(jnp.bfloat16)
    w3 = jax.random.uniform(kw3, (1, D3), dtype=jnp.float32, minval=-0.1, maxval=0.1)
    out3 = jax.block_until_ready(attention_pool(x3, w3, None, tl=32))
    ref3 = reference_attention_pool(x3.astype(jnp.float32), w3, jnp.float32(0.0))
    assert out3.shape == (B3, D3)
    assert jnp.allclose(out3.astype(jnp.float32), ref3, atol=2e-2, rtol=2e-2), "mismatch (bf16 path)"

    print("KERNEL_OK")
</pallas_src>

<mosaic_0001>
module attributes {stable_mosaic.version = 11 : i64} {
  func.func @_attn_pool_single_kernel(%arg0: i32, %arg1: memref<2x8x32xf32, #tpu.memory_space<vmem>>, %arg2: memref<1x32xf32, #tpu.memory_space<vmem>>, %arg3: memref<2x32xf32, #tpu.memory_space<vmem>>) attributes {dimension_semantics = [#tpu.dimension_semantics<parallel>], iteration_bounds = array<i64: 1>, scalar_prefetch = 0 : i64, scratch_operands = 0 : i64, tpu.core_type = #tpu.core_type<tc>, window_params = [{transform_indices = @transform_0, window_bounds = array<i64: 2, 8, 32>}, {pipeline_mode = #tpu.pipeline_mode<synchronous>, transform_indices = @transform_1, window_bounds = array<i64: 1, 32>}, {transform_indices = @transform_2, window_bounds = array<i64: 2, 32>}]} {
    %c0 = arith.constant 0 : index
    %c0_0 = arith.constant 0 : index
    %c0_1 = arith.constant 0 : index
    %0 = vector.load %arg1[%c0, %c0_0, %c0_1] : memref<2x8x32xf32, #tpu.memory_space<vmem>>, vector<2x8x32xf32>
    %c0_2 = arith.constant 0 : index
    %c0_3 = arith.constant 0 : index
    %1 = vector.load %arg2[%c0_2, %c0_3] : memref<1x32xf32, #tpu.memory_space<vmem>>, vector<1x32xf32>
    %2 = vector.shape_cast %1 : vector<1x32xf32> to vector<1x1x32xf32>
    %3 = vector.broadcast %2 : vector<1x1x32xf32> to vector<2x8x32xf32>
    %4 = arith.mulf %0, %3 : vector<2x8x32xf32>
    %cst = arith.constant dense<0.000000e+00> : vector<2x8xf32>
    %5 = vector.multi_reduction <add>, %4, %cst [2] : vector<2x8x32xf32> to vector<2x8xf32>
    %6 = vector.shape_cast %5 : vector<2x8xf32> to vector<2x8x1xf32>
    %cst_4 = arith.constant dense<0xFF800000> : vector<2x1xf32>
    %7 = vector.multi_reduction <maximumf>, %6, %cst_4 [1] : vector<2x8x1xf32> to vector<2x1xf32>
    %8 = vector.shape_cast %7 : vector<2x1xf32> to vector<2x1x1xf32>
    %9 = vector.broadcast %8 : vector<2x1x1xf32> to vector<2x8x1xf32>
    %10 = arith.subf %6, %9 : vector<2x8x1xf32>
    %11 = math.exp %10 : vector<2x8x1xf32>
    %cst_5 = arith.constant dense<0.000000e+00> : vector<2x1xf32>
    %12 = vector.multi_reduction <add>, %11, %cst_5 [1] : vector<2x8x1xf32> to vector<2x1xf32>
    %13 = vector.broadcast %11 : vector<2x8x1xf32> to vector<2x8x32xf32>
    %14 = arith.mulf %0, %13 : vector<2x8x32xf32>
    %cst_6 = arith.constant dense<0.000000e+00> : vector<2x32xf32>
    %15 = vector.multi_reduction <add>, %14, %cst_6 [1] : vector<2x8x32xf32> to vector<2x32xf32>
    %16 = tpu.reciprocal %12 : vector<2x1xf32> -> vector<2x1xf32>
    %17 = vector.broadcast %16 : vector<2x1xf32> to vector<2x32xf32>
    %18 = arith.mulf %15, %17 : vector<2x32xf32>
    %c0_7 = arith.constant 0 : index
    %c0_8 = arith.constant 0 : index
    %19 = vector.load %arg3[%c0_7, %c0_8] : memref<2x32xf32, #tpu.memory_space<vmem>>, vector<2x32xf32>
    tpu.vector_store %arg3[%c0_7, %c0_8], %18 {strides = array<i32>} : memref<2x32xf32, #tpu.memory_space<vmem>>, vector<2x32xf32>,
    return
  }
  func.func @transform_0(%arg0: i32) -> (i32, i32, i32) {
    %c0_i32 = arith.constant 0 : i32
    %c0_i32_0 = arith.constant 0 : i32
    %c0_i32_1 = arith.constant 0 : i32
    return %arg0, %c0_i32, %c0_i32_0 : i32, i32, i32
  }
  func.func @transform_1(%arg0: i32) -> (i32, i32) {
    %c0_i32 = arith.constant 0 : i32
    %c0_i32_0 = arith.constant 0 : i32
    %c0_i32_1 = arith.constant 0 : i32
    return %c0_i32, %c0_i32_0 : i32, i32
  }
  func.func @transform_2(%arg0: i32) -> (i32, i32) {
    %c0_i32 = arith.constant 0 : i32
    %c0_i32_0 = arith.constant 0 : i32
    return %arg0, %c0_i32 : i32, i32
  }
}

</mosaic_0001>

<bundles_post_ra>
// kernel: tpu_custom_call.1
= control target key start
LH: loop header
LB: loop body
LE: loop exit
PB: predicated region body
PF: predicated region fallthrough
CT: control target
= control target key end

     0   :  { %7 = vsyncpa [#allocation3], 0  ;;  %s283_s0 = inlined_call_operand.hbm [shape: f32[2,8,32], index: 0, kind: input, shape index: {}]   ;;  %s284_s1 = inlined_call_operand.hbm [shape: f32[1,32], index: 1, kind: input, shape index: {}]   ;;  %s285_s2 = inlined_call_operand.hbm [shape: f32[2,32], index: 2, kind: output, shape index: {}]  }
   0x1   :  { %8 = vsyncpa [#allocation6], 0 }
   0x2   :  { %9 = vsyncpa [#allocation4], 0  ;;  %s14_s11 = sshll.u32 %s283_s0, 4  ;;  %s250_s12 = smov [#allocation2]   ;;  %s15_s11 = int_to_ptr.hbm [resolvable:$true] %s14_s11 }
   0x3   :  { %s16_s13 = sshll.u32 %s250_s12, 4  ;;  %s28_s16 = sshll.u32 %s284_s1, 4  ;;  %s17_s13 = int_to_ptr.vmem [resolvable:$true] %s16_s13  ;;  %s29_s16 = int_to_ptr.hbm [resolvable:$true] %s28_s16 }
   0x4   :  { %s251_s17 = smov 128   ;;  %s252_s18 = smov 8  }
   0x5   :  { %22 = dma.hbm_to_vmem [thread:$0]  %s15_s11, 256, %s17_s13, [#allocation3], %s251_s17, %s251_s17, %s252_s18  }
   0x6   :  { %s253_s19 = smov [#allocation5]  }
   0x7   :  { %s30_s20 = sshll.u32 %s253_s19, 4  ;;  %s31_s20 = int_to_ptr.vmem [resolvable:$true] %s30_s20 }
   0x8   :  { %33 = dma.hbm_to_vmem [thread:$0]  %s29_s16, 16, %s31_s20, [#allocation6]  }
   0x9   :  { %244 = dma.done.wait [#allocation3], 256  }
   0xa   :  { %245 = vsyncadd [#allocation3], 4294967040 }
   0xb   :  { %246 = dma.done.wait [#allocation6], 16  }
   0xc   :  { %247 = vsyncadd [#allocation6], 4294967280  ;;  %v42_v0 = vld [vmem:[#allocation2] sm:$0xff]  ;;  %v163_v1 = vld [vmem:[#allocation5] ss:$0 sm:$0xff]  ;;  %vm50_vm0 = vcmask 261120  }
   0xd   :  { %v48_v2 = vmul.f32 %v163_v1, %v42_v0  ;;  %v43_v3 = vld [vmem:[#allocation2 + $0x8] sm:$0xff]  ;;  %s254_s0 = smov [#allocation7]   ;;  %s147_s23 = sshll.u32 %s285_s2, 4  ;;  %vm135_vm9 = vcmask 1041409   ;;  %vm138_vm10 = vcmask 254976   ;;  %s148_s23 = int_to_ptr.hbm [resolvable:$true] %s147_s23 }
   0xe   :  { %v49_v5 = vmul.f32 %v163_v1, %v43_v3  ;;  %s145_s1 = sshll.u32 %s254_s0, 4  ;;  %s146_s1 = int_to_ptr.vmem [resolvable:$true] %s145_s1 }
   0xf   :  { %v51_v4 = vsel %vm50_vm0, %v48_v2, 0.0 }
  0x10   :  { %52 = vadd.xlane.f32.xlu0 %v51_v4  ;;  %v54_v6 = vsel %vm50_vm0, %v49_v5, 0.0 }
  0x18   :  { %55 = vadd.xlane.f32.xlu0 %v54_v6 }
  0x83   :  { %v53_v7 = vpop.xlane.xlu0 %52 }
  0x84   :  { %v57_v8 = vrot.slane %v53_v7, 4 }
  0x86   :  { %v58_v9 = vmax.f32 %v53_v7, %v57_v8 }
  0x88   :  { %v59_v10 = vrot.slane %v58_v9, 2 }
  0x8a   :  { %v60_v11 = vmax.f32 %v58_v9, %v59_v10 }
  0x8b   :  { %v56_v12 = vpop.xlane.xlu0 %55 }
  0x8c   :  { %v61_v13 = vrot.slane %v60_v11, 1  ;;  %v63_v14 = vrot.slane %v56_v12, 4 }
  0x8e   :  { %v62_v15 = vmax.f32 %v60_v11, %v61_v13  ;;  %v64_v16 = vmax.f32 %v56_v12, %v63_v14 }
  0x90   :  { %v69_v17 = vsub.f32 %v53_v7, %v62_v15  ;;  %v65_v18 = vrot.slane %v64_v16, 2 }
  0x92   :  { %v71_v19 = vmul.f32 1.442695, %v69_v17  ;;  %v66_v20 = vmax.f32 %v64_v16, %v65_v18 }
  0x94   :  { %164 = vpow2.f32 %v71_v19  ;;  %v67_v21 = vrot.slane %v66_v20, 1 }
  0x96   :  { %v68_v22 = vmax.f32 %v66_v20, %v67_v21 }
  0x98   :  { %v70_v23 = vsub.f32 %v56_v12, %v68_v22 }
  0x9a   :  { %v165_v24 = vpop.eup %164  ;;  %v73_v25 = vmul.f32 1.442695, %v70_v23 }
  0x9b   :  { %v75_v26 = vrot.slane %v165_v24, 4  ;;  %v87_v31 = vmul.f32 %v165_v24, %v42_v0 }
  0x9c   :  { %166 = vpow2.f32 %v73_v25 }
  0x9d   :  { %v76_v27 = vadd.f32 %v165_v24, %v75_v26  ;;  %v89_v37 = vsel %vm50_vm0, %v87_v31, 0.0 }
  0x9e   :  { %v90_v41 = vrot.slane %v89_v37, 4 }
  0x9f   :  { %v77_v28 = vrot.slane %v76_v27, 2 }
  0xa0   :  { %v91_v46 = vadd.f32 %v90_v41, %v89_v37 }
  0xa1   :  { %v78_v29 = vadd.f32 %v77_v28, %v76_v27 }
  0xa2   :  { %v167_v30 = vpop.eup %166  ;;  %v92_v50 = vrot.slane %v91_v46, 2 }
  0xa3   :  { %v79_v32 = vrot.slane %v78_v29, 1  ;;  %v81_v33 = vrot.slane %v167_v30, 4  ;;  %v88_v34 = vmul.f32 %v167_v30, %v43_v3 }
  0xa4   :  { %v93_v54 = vadd.f32 %v92_v50, %v91_v46 }
  0xa5   :  { %v80_v35 = vadd.f32 %v79_v32, %v78_v29  ;;  %v82_v36 = vadd.f32 %v167_v30, %v81_v33  ;;  %v96_v38 = vsel %vm50_vm0, %v88_v34, 0.0 }
  0xa6   :  { %v97_v42 = vrot.slane %v96_v38, 4  ;;  %v94_v61 = vrot.slane %v93_v54, 1 }
  0xa7   :  { %168 = vrcp.f32 %v80_v35  ;;  %v83_v39 = vrot.slane %v82_v36, 2  ;;  %v114_v58 = vand.u32 2147483648, %v80_v35  ;;  %vm108_vm2 = vweird.f32 %v80_v35 }
  0xa8   :  { %v98_v47 = vadd.f32 %v97_v42, %v96_v38  ;;  %v112_v59 = vand.u32 2147483647, %v80_v35  ;;  %v95_v7 = vadd.f32 %v94_v61, %v93_v54 }
  0xa9   :  { %v84_v40 = vadd.f32 %v83_v39, %v82_v36  ;;  %v115_v3 = vor.u32 1.1754944e-38, %v114_v58 }
  0xaa   :  { %v99_v51 = vrot.slane %v98_v47, 2  ;;  %vm113_vm5 = vcmp.eq.f32.partialorder %v112_v59, 8.507059e+37 }
  0xab   :  { %v85_v43 = vrot.slane %v84_v40, 1 }
  0xac   :  { %v100_v55 = vadd.f32 %v99_v51, %v98_v47 }
  0xad   :  { %v169_v44 = vpop.eup %168  ;;  %v86_v45 = vadd.f32 %v85_v43, %v84_v40 }
  0xae   :  { %v104_v48 = vmul.f32 %v169_v44, %v80_v35  ;;  %vm109_vm1 = vweird.f32 %v169_v44  ;;  %v101_v62 = vrot.slane %v100_v55, 1 }
  0xaf   :  { %170 = vrcp.f32 %v86_v45  ;;  %vm110_vm3 = vmor %vm108_vm2, %vm109_vm1  ;;  %v128_v63 = vand.u32 2147483648, %v86_v45  ;;  %v126_v2 = vand.u32 2147483647, %v86_v45  ;;  %vm122_vm6 = vweird.f32 %v86_v45 }
  0xb0   :  { %v105_v49 = vsub.f32 1.0, %v104_v48  ;;  %v102_v8 = vadd.f32 %v101_v62, %v100_v55 }
  0xb1   :  { %v129_v6 = vor.u32 1.1754944e-38, %v128_v63  ;;  %vm127_vm8 = vcmp.eq.f32.partialorder %v126_v2, 8.507059e+37 }
  0xb2   :  { %v106_v52 = vmul.f32 %v169_v44, %v105_v49 }
  0xb4   :  { %v107_v56 = vadd.f32 %v169_v44, %v106_v52 }
  0xb5   :  { %v171_v53 = vpop.eup %170 }
  0xb6   :  { %v118_v57 = vmul.f32 %v171_v53, %v86_v45  ;;  %v111_v0 = vsel %vm110_vm3, %v169_v44, %v107_v56  ;;  %vm123_vm4 = vweird.f32 %v171_v53 }
  0xb7   :  { %v116_v5 = vsel %vm113_vm5, %v115_v3, %v111_v0  ;;  %vm124_vm7 = vmor %vm122_vm6, %vm123_vm4 }
  0xb8   :  { %v119_v60 = vsub.f32 1.0, %v118_v57  ;;  %v131_v11 = vmul.f32 %v116_v5, %v95_v7 }
  0xba   :  { %v120_v1 = vmul.f32 %v171_v53, %v119_v60 }
  0xbc   :  { %v121_v4 = vadd.f32 %v171_v53, %v120_v1 }
  0xbe   :  { %v125_v9 = vsel %vm124_vm7, %v171_v53, %v121_v4 }
  0xbf   :  { %v130_v10 = vsel %vm127_vm8, %v129_v6, %v125_v9 }
  0xc0   :  { %v132_v12 = vmul.f32 %v130_v10, %v102_v8 }
  0xc2   :  { %v136_v13 = vsel %vm135_vm9, %v132_v12, %v131_v11 }
  0xc3   :  { %139 = vst.msk [vmem:[#allocation7] sm:$0x3] %vm138_vm10, %v136_v13 }
  0xc4   :  { %150 = dma.vmem_to_hbm [thread:$0]  %s146_s1, 32, %s148_s23, [#allocation4]  }
  0xc5   :  { %248 = dma.done.wait [#allocation4], 32  }
  0xc6   :  { %249 = vsyncadd [#allocation4], 4294967264 }
  0xc7   :  { %155 = vsyncpa [#allocation3], 1 }
  0xc8   :  { %156 = vsyncpa [#allocation6], 1 }
  0xc9   :  { %157 = vsyncpa [#allocation4], 1 }

</bundles_post_ra>
